<compile_context>
chip_gen: v5e
topology: v5e:2x2
jax: 0.10.0
libtpu: 0.0.40
codegen_flags: <defaults>
</compile_context>

<pallas_src>
import math

import jax
import jax.numpy as jnp
from jax.experimental import pallas as pl
from jax.experimental.pallas import tpu as pltpu

# ---- small, deterministic config (mirrors the module's __init__ shapes) ----
VOCAB = 50          # config.vocab_size
PAD = 0             # config.pad
BLOCK_SIZE = 16     # config.seq_length
D = 32              # config.d_size
NHEAD = 4           # config.nhead
DK = 8              # config.k_size
DV = 8              # config.v_size
B = 2               # batch
T = 8               # actual sequence length (assert t < block_size)
HQK = NHEAD * DK    # 32
HV = NHEAD * DV     # 32
DFF = 4 * D         # 128
LN_EPS = 1e-5       # PyTorch LayerNorm default
NEG_INF = -1e9
N_VEC = 7           # packed rows: b1, bo, g1, beta1, b2, g2, beta2


def _layer_norm(h, gamma, beta):
    # one-pass mean / mean-of-squares (halves cross-lane XLU reductions)
    mu = jnp.mean(h, axis=-1, keepdims=True)
    ms = jnp.mean(h * h, axis=-1, keepdims=True)
    var = ms - mu * mu
    return (h - mu) * jax.lax.rsqrt(var + LN_EPS) * gamma + beta


def encoder_kernel(ids_ref, bias_ref, tok_ref, wslab_ref, w2_ref, pslab_ref, out_ref):
    rows = ids_ref.shape[0]          # per-block row count (nb * t)

    # ---- unpack the single f32 parameter slab ----
    ps = pslab_ref[...]
    pos = ps[0:rows, 0:D]                      # tiled positional embedding
    b1 = ps[rows:rows + 1, :]                  # (1, DFF)
    bo = ps[rows + 1:rows + 2, 0:D]
    g1 = ps[rows + 2:rows + 3, 0:D]
    beta1 = ps[rows + 3:rows + 4, 0:D]
    b2 = ps[rows + 4:rows + 5, 0:D]
    g2 = ps[rows + 5:rows + 6, 0:D]
    beta2 = ps[rows + 6:rows + 7, 0:D]

    # ---- unpack the single bf16 weight slab [A; M; W1] ----
    ws = wslab_ref[...]
    a_slab = ws[0:D, :]                        # concat_h(scale * Wq_h Wk_h^T)  (D, NHEAD*D)
    m_slab = ws[D:2 * D, :]                    # concat_h(Wv_h Wo_h)            (D, NHEAD*D)
    w1 = ws[2 * D:3 * D, :]                    # FFN first linear               (D, DFF)

    # ---- fused token-embedding gather (exact one-hot matmul) + positional add ----
    ids = ids_ref[...]                                                   # (rows, 1) int32
    iota = jax.lax.broadcasted_iota(jnp.int32, (rows, VOCAB), 1)
    onehot = (iota == ids).astype(jnp.bfloat16)                          # exact in bf16
    x = jnp.dot(onehot, tok_ref[...], preferred_element_type=jnp.float32) + pos   # (rows, D)

    # ---- attention with folded projections: s_h = (x A_h) x^T,  attn_h = p_h (x M_h) ----
    x_bf = x.astype(jnp.bfloat16)
    xt_bf = x_bf.T                                                       # single transpose
    xa = jnp.dot(x_bf, a_slab, preferred_element_type=jnp.float32).astype(jnp.bfloat16)
    xm = jnp.dot(x_bf, m_slab, preferred_element_type=jnp.float32).astype(jnp.bfloat16)

    bias = bias_ref[...]                                                 # (rows, rows), head-invariant

    attn = jnp.zeros((rows, D), jnp.float32)
    for h in range(NHEAD):                                               # static unroll
        s = jnp.dot(xa[:, h * D:(h + 1) * D], xt_bf,
                    preferred_element_type=jnp.float32) + bias           # (rows, rows)
        s = s - jnp.max(s, axis=-1, keepdims=True)
        p = jnp.exp(s)
        p = p * pl.reciprocal(jnp.sum(p, axis=-1, keepdims=True), approx=True)
        attn = attn + jnp.dot(p.astype(jnp.bfloat16), xm[:, h * D:(h + 1) * D],
                              preferred_element_type=jnp.float32)        # (rows, D)
    attn = attn + bo

    # ---- AddNorm 1: LayerNorm(x + attn(x)) ----
    n1 = _layer_norm(x + attn, g1, beta1)

    # ---- FeedForward: Linear(D, 4D) -> ReLU -> Linear(4D, D) ----
    f = jnp.dot(n1.astype(jnp.bfloat16), w1, preferred_element_type=jnp.float32) + b1
    f = jnp.maximum(f, 0.0)
    f = jnp.dot(f.astype(jnp.bfloat16), w2_ref[...], preferred_element_type=jnp.float32) + b2

    # ---- AddNorm 2: LayerNorm(n1 + ffn(n1)) ----
    n2 = _layer_norm(n1 + f, g2, beta2)

    # TODO(synk): output last dim is 32 (<128 lanes) so this store is masked; a
    # lane-dense relayout only pays off once the output grows past a few vregs.
    out_ref[...] = n2.astype(out_ref.dtype)


def init_params(key):
    ks = jax.random.split(key, 7)
    scale = 0.02
    tok_emb = scale * jax.random.normal(ks[0], (VOCAB, D), jnp.float32)
    tok_emb = tok_emb.at[PAD].set(0.0)                    # padding_idx row is zero
    pos_emb = jnp.zeros((1, BLOCK_SIZE, D), jnp.float32)  # nn.Parameter(np.zeros(...))

    wq = scale * jax.random.normal(ks[1], (D, HQK), jnp.float32)
    wk = scale * jax.random.normal(ks[2], (D, HQK), jnp.float32)
    wv = scale * jax.random.normal(ks[3], (D, HV), jnp.float32)
    wo = scale * jax.random.normal(ks[4], (HV, D), jnp.float32)
    w1 = scale * jax.random.normal(ks[5], (D, DFF), jnp.float32)
    w2 = scale * jax.random.normal(ks[6], (DFF, D), jnp.float32)

    # TODO(synk): the Wq·Wk^T fold is exact only for zero Q/K biases (as here);
    # nonzero bq/bk would need a rank-1 score correction.
    bv = jnp.zeros((HV,), jnp.float32)
    bo = jnp.zeros((D,), jnp.float32)

    # per-head folds (softmax scale folded into the Q·K^T slab)
    sm = 1.0 / math.sqrt(DK)
    wq3 = wq.reshape(D, NHEAD, DK)
    wk3 = wk.reshape(D, NHEAD, DK)
    wv3 = wv.reshape(D, NHEAD, DV)
    wo3 = wo.reshape(NHEAD, DV, D)
    a3 = sm * jnp.einsum("dhk,ehk->hde", wq3, wk3)        # (NHEAD, D, D)
    m3 = jnp.einsum("dhv,hve->hde", wv3, wo3)             # (NHEAD, D, D)
    a_slab = a3.transpose(1, 0, 2).reshape(D, NHEAD * D)  # (32, 128)
    m_slab = m3.transpose(1, 0, 2).reshape(D, NHEAD * D)  # (32, 128)

    wslab = jnp.concatenate([a_slab, m_slab, w1], axis=0).astype(jnp.bfloat16)  # (96, 128)
    bo_eff = bo + bv @ wo   # softmax rows sum to 1 -> V bias folds into output bias

    return dict(
        tok_emb=tok_emb.astype(jnp.bfloat16),
        pos_emb=pos_emb,
        wslab=wslab,
        w2=w2.astype(jnp.bfloat16),
        b1=jnp.zeros((DFF,), jnp.float32),
        bo=bo_eff,
        b2=jnp.zeros((D,), jnp.float32),
        g1=jnp.ones((D,), jnp.float32),
        beta1=jnp.zeros((D,), jnp.float32),
        g2=jnp.ones((D,), jnp.float32),
        beta2=jnp.zeros((D,), jnp.float32),
    )


def _batches_per_block(b):
    # v7x has 2 TensorCores/chip: one batch per grid block + "parallel" uses both.
    # v5e/v6e (1 TC): fold all batches into a single block (no per-step overhead).
    try:
        kind = jax.devices()[0].device_kind.lower()
    except Exception:
        kind = ""
    if "v7" in kind or "tpu7" in kind:
        return 1
    return b


def encoder_forward(x_ids, mask, params, batches_per_block=None):
    b, t = x_ids.shape
    assert t < BLOCK_SIZE
    if batches_per_block is None:
        batches_per_block = _batches_per_block(b)
    nb = batches_per_block
    assert b % nb == 0
    grid_b = b // nb
    rows = nb * t

    ids2d = x_ids.reshape(b * t, 1).astype(jnp.int32)

    # ---- one packed f32 parameter slab: tiled pos + all small vectors ----
    pos_block = jnp.tile(params["pos_emb"][0, :t, :], (nb, 1))           # (rows, D)
    pad_rows = -(-(rows + N_VEC) // 8) * 8
    pslab = jnp.zeros((pad_rows, DFF), jnp.float32)
    pslab = pslab.at[0:rows, 0:D].set(pos_block)
    pslab = pslab.at[rows, :].set(params["b1"])
    for off, name in enumerate(("bo", "g1", "beta1", "b2", "g2", "beta2")):
        pslab = pslab.at[rows + 1 + off, 0:D].set(params[name])

    # ---- additive attention bias: block-diagonal over batches in a block + user mask ----
    allow = jnp.logical_and(
        jnp.eye(b, dtype=bool)[:, None, :, None],       # same-batch only
        (mask > 0)[:, :, None, :],                      # 1 = attend
    )                                                   # (b, t, b, t)
    full = jnp.where(allow, 0.0, NEG_INF).astype(jnp.float32).reshape(b * t, b * t)
    bias = jnp.concatenate(
        [full[g * rows:(g + 1) * rows, g * rows:(g + 1) * rows] for g in range(grid_b)],
        axis=0)                                         # (b*t, rows)

    blk = lambda g: (g, 0)
    rep = lambda g: (0, 0)

    out2d = pl.pallas_call(
        encoder_kernel,
        out_shape=jax.ShapeDtypeStruct((b * t, D), jnp.float32),
        grid_spec=pltpu.PrefetchScalarGridSpec(
            num_scalar_prefetch=0,
            grid=(grid_b,),
            in_specs=[
                pl.BlockSpec((rows, 1), blk),           # token ids
                pl.BlockSpec((rows, rows), blk),        # additive attention bias
                pl.BlockSpec((VOCAB, D), rep),          # token embedding table (bf16)
                pl.BlockSpec((3 * D, 4 * D), rep),      # [A; M; W1] weight slab (bf16)
                pl.BlockSpec((DFF, D), rep),            # W2 (bf16)
                pl.BlockSpec((pad_rows, DFF), rep),     # f32 parameter slab
            ],
            out_specs=pl.BlockSpec((rows, D), blk),
        ),
        compiler_params=pltpu.CompilerParams(
            dimension_semantics=(("parallel",) if grid_b > 1 else ("arbitrary",))),
    )(ids2d, bias, params["tok_emb"], params["wslab"], params["w2"], pslab)
    return out2d.reshape(b, t, D)


if __name__ == "__main__":
    key = jax.random.PRNGKey(0)
    pkey, xkey = jax.random.split(key)
    params = init_params(pkey)

    # Deterministic inputs: token ids in [1, VOCAB) and a padding-style mask.
    x_ids = jax.random.randint(xkey, (B, T), 1, VOCAB, dtype=jnp.int32)
    lengths = jnp.array([T, T - 2], dtype=jnp.int32)
    col = jnp.arange(T)[None, None, :]                         # (1, 1, T)
    mask = (col < lengths[:, None, None]).astype(jnp.float32)  # (B, 1, T)
    mask = jnp.broadcast_to(mask, (B, T, T))                   # (B, T, T), 1 = attend

    # TODO(synk): dropout is identity (eval mode); training-mode dropout not implemented.
    out = jax.jit(encoder_forward)(x_ids, mask, params)
    jax.block_until_ready(out)
    assert out.shape == (B, T, D)
    assert bool(jnp.all(jnp.isfinite(out)))
    print("KERNEL_OK")
</pallas_src>

<mosaic_0001>
module attributes {stable_mosaic.version = 11 : i64} {
  func.func @encoder_kernel(%arg0: i32, %arg1: memref<16x1xi32, #tpu.memory_space<vmem>>, %arg2: memref<16x16xf32, #tpu.memory_space<vmem>>, %arg3: memref<50x32xbf16, #tpu.memory_space<vmem>>, %arg4: memref<96x128xbf16, #tpu.memory_space<vmem>>, %arg5: memref<128x32xbf16, #tpu.memory_space<vmem>>, %arg6: memref<24x128xf32, #tpu.memory_space<vmem>>, %arg7: memref<16x32xf32, #tpu.memory_space<vmem>>) attributes {dimension_semantics = [#tpu.dimension_semantics<arbitrary>], iteration_bounds = array<i64: 1>, scalar_prefetch = 0 : i64, scratch_operands = 0 : i64, tpu.core_type = #tpu.core_type<tc>, window_params = [{transform_indices = @transform_0, window_bounds = array<i64: 16, 1>}, {transform_indices = @transform_1, window_bounds = array<i64: 16, 16>}, {pipeline_mode = #tpu.pipeline_mode<synchronous>, transform_indices = @transform_2, window_bounds = array<i64: 50, 32>}, {pipeline_mode = #tpu.pipeline_mode<synchronous>, transform_indices = @transform_3, window_bounds = array<i64: 96, 128>}, {pipeline_mode = #tpu.pipeline_mode<synchronous>, transform_indices = @transform_4, window_bounds = array<i64: 128, 32>}, {pipeline_mode = #tpu.pipeline_mode<synchronous>, transform_indices = @transform_5, window_bounds = array<i64: 24, 128>}, {transform_indices = @transform_6, window_bounds = array<i64: 16, 32>}]} {
    %c0 = arith.constant 0 : index
    %c0_0 = arith.constant 0 : index
    %0 = vector.load %arg6[%c0, %c0_0] : memref<24x128xf32, #tpu.memory_space<vmem>>, vector<24x128xf32>
    %1 = vector.extract_strided_slice %0 {offsets = [0, 0], sizes = [16, 32], strides = [1, 1]} : vector<24x128xf32> to vector<16x32xf32>
    %2 = vector.extract_strided_slice %0 {offsets = [16, 0], sizes = [1, 128], strides = [1, 1]} : vector<24x128xf32> to vector<1x128xf32>
    %3 = vector.extract_strided_slice %0 {offsets = [17, 0], sizes = [1, 32], strides = [1, 1]} : vector<24x128xf32> to vector<1x32xf32>
    %4 = vector.extract_strided_slice %0 {offsets = [18, 0], sizes = [1, 32], strides = [1, 1]} : vector<24x128xf32> to vector<1x32xf32>
    %5 = vector.extract_strided_slice %0 {offsets = [19, 0], sizes = [1, 32], strides = [1, 1]} : vector<24x128xf32> to vector<1x32xf32>
    %6 = vector.extract_strided_slice %0 {offsets = [20, 0], sizes = [1, 32], strides = [1, 1]} : vector<24x128xf32> to vector<1x32xf32>
    %7 = vector.extract_strided_slice %0 {offsets = [21, 0], sizes = [1, 32], strides = [1, 1]} : vector<24x128xf32> to vector<1x32xf32>
    %8 = vector.extract_strided_slice %0 {offsets = [22, 0], sizes = [1, 32], strides = [1, 1]} : vector<24x128xf32> to vector<1x32xf32>
    %c0_1 = arith.constant 0 : index
    %c0_2 = arith.constant 0 : index
    %9 = vector.load %arg4[%c0_1, %c0_2] : memref<96x128xbf16, #tpu.memory_space<vmem>>, vector<96x128xbf16>
    %10 = vector.extract_strided_slice %9 {offsets = [0, 0], sizes = [32, 128], strides = [1, 1]} : vector<96x128xbf16> to vector<32x128xbf16>
    %11 = vector.extract_strided_slice %9 {offsets = [32, 0], sizes = [32, 128], strides = [1, 1]} : vector<96x128xbf16> to vector<32x128xbf16>
    %12 = vector.extract_strided_slice %9 {offsets = [64, 0], sizes = [32, 128], strides = [1, 1]} : vector<96x128xbf16> to vector<32x128xbf16>
    %c0_3 = arith.constant 0 : index
    %c0_4 = arith.constant 0 : index
    %13 = vector.load %arg1[%c0_3, %c0_4] : memref<16x1xi32, #tpu.memory_space<vmem>>, vector<16x1xi32>
    %14 = tpu.iota {dimensions = array<i32: 1>} : vector<16x50xi32>
    %15 = vector.broadcast %13 : vector<16x1xi32> to vector<16x50xi32>
    %16 = arith.cmpi eq, %14, %15 : vector<16x50xi32>
    %17 = arith.extui %16 : vector<16x50xi1> to vector<16x50xi32>
    %18 = arith.sitofp %17 : vector<16x50xi32> to vector<16x50xf32>
    %19 = arith.truncf %18 : vector<16x50xf32> to vector<16x50xbf16>
    %c0_5 = arith.constant 0 : index
    %c0_6 = arith.constant 0 : index
    %20 = vector.load %arg3[%c0_5, %c0_6] : memref<50x32xbf16, #tpu.memory_space<vmem>>, vector<50x32xbf16>
    %cst = arith.constant dense<0.000000e+00> : vector<16x32xf32>
    %21 = tpu.matmul %19, %20, %cst {dimension_numbers = #tpu.dot_dimension_numbers<[1], [0], [0], [1], [0, 0, 1, 1], [], []>} : vector<16x50xbf16>, vector<50x32xbf16>, vector<16x32xf32> -> vector<16x32xf32>
    %22 = arith.addf %21, %1 : vector<16x32xf32>
    %23 = arith.truncf %22 : vector<16x32xf32> to vector<16x32xbf16>
    %24 = tpu.transpose %23, [1, 0] : vector<16x32xbf16> -> vector<32x16xbf16>
    %cst_7 = arith.constant dense<0.000000e+00> : vector<16x128xf32>
    %25 = tpu.matmul %23, %10, %cst_7 {dimension_numbers = #tpu.dot_dimension_numbers<[1], [0], [0], [1], [0, 0, 1, 1], [], []>} : vector<16x32xbf16>, vector<32x128xbf16>, vector<16x128xf32> -> vector<16x128xf32>
    %26 = arith.truncf %25 : vector<16x128xf32> to vector<16x128xbf16>
    %cst_8 = arith.constant dense<0.000000e+00> : vector<16x128xf32>
    %27 = tpu.matmul %23, %11, %cst_8 {dimension_numbers = #tpu.dot_dimension_numbers<[1], [0], [0], [1], [0, 0, 1, 1], [], []>} : vector<16x32xbf16>, vector<32x128xbf16>, vector<16x128xf32> -> vector<16x128xf32>
    %28 = arith.truncf %27 : vector<16x128xf32> to vector<16x128xbf16>
    %c0_9 = arith.constant 0 : index
    %c0_10 = arith.constant 0 : index
    %29 = vector.load %arg2[%c0_9, %c0_10] : memref<16x16xf32, #tpu.memory_space<vmem>>, vector<16x16xf32>
    %cst_11 = arith.constant 0.000000e+00 : f32
    %30 = vector.broadcast %cst_11 : f32 to vector<16x32xf32>
    %31 = vector.extract_strided_slice %26 {offsets = [0, 0], sizes = [16, 32], strides = [1, 1]} : vector<16x128xbf16> to vector<16x32xbf16>
    %cst_12 = arith.constant dense<0.000000e+00> : vector<16x16xf32>
    %32 = tpu.matmul %31, %24, %cst_12 {dimension_numbers = #tpu.dot_dimension_numbers<[1], [0], [0], [1], [0, 0, 1, 1], [], []>} : vector<16x32xbf16>, vector<32x16xbf16>, vector<16x16xf32> -> vector<16x16xf32>
    %33 = arith.addf %32, %29 : vector<16x16xf32>
    %cst_13 = arith.constant dense<0xFF800000> : vector<16xf32>
    %34 = vector.multi_reduction <maximumf>, %33, %cst_13 [1] : vector<16x16xf32> to vector<16xf32>
    %35 = vector.shape_cast %34 : vector<16xf32> to vector<16x1xf32>
    %36 = vector.broadcast %35 : vector<16x1xf32> to vector<16x16xf32>
    %37 = arith.subf %33, %36 : vector<16x16xf32>
    %38 = math.exp %37 : vector<16x16xf32>
    %cst_14 = arith.constant dense<0.000000e+00> : vector<16xf32>
    %39 = vector.multi_reduction <add>, %38, %cst_14 [1] : vector<16x16xf32> to vector<16xf32>
    %40 = vector.shape_cast %39 : vector<16xf32> to vector<16x1xf32>
    %41 = tpu.reciprocal %40 {approx = true} : vector<16x1xf32> -> vector<16x1xf32>
    %42 = vector.broadcast %41 : vector<16x1xf32> to vector<16x16xf32>
    %43 = arith.mulf %38, %42 : vector<16x16xf32>
    %44 = arith.truncf %43 : vector<16x16xf32> to vector<16x16xbf16>
    %45 = vector.extract_strided_slice %28 {offsets = [0, 0], sizes = [16, 32], strides = [1, 1]} : vector<16x128xbf16> to vector<16x32xbf16>
    %cst_15 = arith.constant dense<0.000000e+00> : vector<16x32xf32>
    %46 = tpu.matmul %44, %45, %cst_15 {dimension_numbers = #tpu.dot_dimension_numbers<[1], [0], [0], [1], [0, 0, 1, 1], [], []>} : vector<16x16xbf16>, vector<16x32xbf16>, vector<16x32xf32> -> vector<16x32xf32>
    %47 = arith.addf %30, %46 : vector<16x32xf32>
    %48 = vector.extract_strided_slice %26 {offsets = [0, 32], sizes = [16, 32], strides = [1, 1]} : vector<16x128xbf16> to vector<16x32xbf16>
    %cst_16 = arith.constant dense<0.000000e+00> : vector<16x16xf32>
    %49 = tpu.matmul %48, %24, %cst_16 {dimension_numbers = #tpu.dot_dimension_numbers<[1], [0], [0], [1], [0, 0, 1, 1], [], []>} : vector<16x32xbf16>, vector<32x16xbf16>, vector<16x16xf32> -> vector<16x16xf32>
    %50 = arith.addf %49, %29 : vector<16x16xf32>
    %cst_17 = arith.constant dense<0xFF800000> : vector<16xf32>
    %51 = vector.multi_reduction <maximumf>, %50, %cst_17 [1] : vector<16x16xf32> to vector<16xf32>
    %52 = vector.shape_cast %51 : vector<16xf32> to vector<16x1xf32>
    %53 = vector.broadcast %52 : vector<16x1xf32> to vector<16x16xf32>
    %54 = arith.subf %50, %53 : vector<16x16xf32>
    %55 = math.exp %54 : vector<16x16xf32>
    %cst_18 = arith.constant dense<0.000000e+00> : vector<16xf32>
    %56 = vector.multi_reduction <add>, %55, %cst_18 [1] : vector<16x16xf32> to vector<16xf32>
    %57 = vector.shape_cast %56 : vector<16xf32> to vector<16x1xf32>
    %58 = tpu.reciprocal %57 {approx = true} : vector<16x1xf32> -> vector<16x1xf32>
    %59 = vector.broadcast %58 : vector<16x1xf32> to vector<16x16xf32>
    %60 = arith.mulf %55, %59 : vector<16x16xf32>
    %61 = arith.truncf %60 : vector<16x16xf32> to vector<16x16xbf16>
    %62 = vector.extract_strided_slice %28 {offsets = [0, 32], sizes = [16, 32], strides = [1, 1]} : vector<16x128xbf16> to vector<16x32xbf16>
    %cst_19 = arith.constant dense<0.000000e+00> : vector<16x32xf32>
    %63 = tpu.matmul %61, %62, %cst_19 {dimension_numbers = #tpu.dot_dimension_numbers<[1], [0], [0], [1], [0, 0, 1, 1], [], []>} : vector<16x16xbf16>, vector<16x32xbf16>, vector<16x32xf32> -> vector<16x32xf32>
    %64 = arith.addf %47, %63 : vector<16x32xf32>
    %65 = vector.extract_strided_slice %26 {offsets = [0, 64], sizes = [16, 32], strides = [1, 1]} : vector<16x128xbf16> to vector<16x32xbf16>
    %cst_20 = arith.constant dense<0.000000e+00> : vector<16x16xf32>
    %66 = tpu.matmul %65, %24, %cst_20 {dimension_numbers = #tpu.dot_dimension_numbers<[1], [0], [0], [1], [0, 0, 1, 1], [], []>} : vector<16x32xbf16>, vector<32x16xbf16>, vector<16x16xf32> -> vector<16x16xf32>
    %67 = arith.addf %66, %29 : vector<16x16xf32>
    %cst_21 = arith.constant dense<0xFF800000> : vector<16xf32>
    %68 = vector.multi_reduction <maximumf>, %67, %cst_21 [1] : vector<16x16xf32> to vector<16xf32>
    %69 = vector.shape_cast %68 : vector<16xf32> to vector<16x1xf32>
    %70 = vector.broadcast %69 : vector<16x1xf32> to vector<16x16xf32>
    %71 = arith.subf %67, %70 : vector<16x16xf32>
    %72 = math.exp %71 : vector<16x16xf32>
    %cst_22 = arith.constant dense<0.000000e+00> : vector<16xf32>
    %73 = vector.multi_reduction <add>, %72, %cst_22 [1] : vector<16x16xf32> to vector<16xf32>
    %74 = vector.shape_cast %73 : vector<16xf32> to vector<16x1xf32>
    %75 = tpu.reciprocal %74 {approx = true} : vector<16x1xf32> -> vector<16x1xf32>
    %76 = vector.broadcast %75 : vector<16x1xf32> to vector<16x16xf32>
    %77 = arith.mulf %72, %76 : vector<16x16xf32>
    %78 = arith.truncf %77 : vector<16x16xf32> to vector<16x16xbf16>
    %79 = vector.extract_strided_slice %28 {offsets = [0, 64], sizes = [16, 32], strides = [1, 1]} : vector<16x128xbf16> to vector<16x32xbf16>
    %cst_23 = arith.constant dense<0.000000e+00> : vector<16x32xf32>
    %80 = tpu.matmul %78, %79, %cst_23 {dimension_numbers = #tpu.dot_dimension_numbers<[1], [0], [0], [1], [0, 0, 1, 1], [], []>} : vector<16x16xbf16>, vector<16x32xbf16>, vector<16x32xf32> -> vector<16x32xf32>
    %81 = arith.addf %64, %80 : vector<16x32xf32>
    %82 = vector.extract_strided_slice %26 {offsets = [0, 96], sizes = [16, 32], strides = [1, 1]} : vector<16x128xbf16> to vector<16x32xbf16>
    %cst_24 = arith.constant dense<0.000000e+00> : vector<16x16xf32>
    %83 = tpu.matmul %82, %24, %cst_24 {dimension_numbers = #tpu.dot_dimension_numbers<[1], [0], [0], [1], [0, 0, 1, 1], [], []>} : vector<16x32xbf16>, vector<32x16xbf16>, vector<16x16xf32> -> vector<16x16xf32>
    %84 = arith.addf %83, %29 : vector<16x16xf32>
    %cst_25 = arith.constant dense<0xFF800000> : vector<16xf32>
    %85 = vector.multi_reduction <maximumf>, %84, %cst_25 [1] : vector<16x16xf32> to vector<16xf32>
    %86 = vector.shape_cast %85 : vector<16xf32> to vector<16x1xf32>
    %87 = vector.broadcast %86 : vector<16x1xf32> to vector<16x16xf32>
    %88 = arith.subf %84, %87 : vector<16x16xf32>
    %89 = math.exp %88 : vector<16x16xf32>
    %cst_26 = arith.constant dense<0.000000e+00> : vector<16xf32>
    %90 = vector.multi_reduction <add>, %89, %cst_26 [1] : vector<16x16xf32> to vector<16xf32>
    %91 = vector.shape_cast %90 : vector<16xf32> to vector<16x1xf32>
    %92 = tpu.reciprocal %91 {approx = true} : vector<16x1xf32> -> vector<16x1xf32>
    %93 = vector.broadcast %92 : vector<16x1xf32> to vector<16x16xf32>
    %94 = arith.mulf %89, %93 : vector<16x16xf32>
    %95 = arith.truncf %94 : vector<16x16xf32> to vector<16x16xbf16>
    %96 = vector.extract_strided_slice %28 {offsets = [0, 96], sizes = [16, 32], strides = [1, 1]} : vector<16x128xbf16> to vector<16x32xbf16>
    %cst_27 = arith.constant dense<0.000000e+00> : vector<16x32xf32>
    %97 = tpu.matmul %95, %96, %cst_27 {dimension_numbers = #tpu.dot_dimension_numbers<[1], [0], [0], [1], [0, 0, 1, 1], [], []>} : vector<16x16xbf16>, vector<16x32xbf16>, vector<16x32xf32> -> vector<16x32xf32>
    %98 = arith.addf %81, %97 : vector<16x32xf32>
    %99 = vector.broadcast %3 : vector<1x32xf32> to vector<16x32xf32>
    %100 = arith.addf %98, %99 : vector<16x32xf32>
    %101 = arith.addf %22, %100 : vector<16x32xf32>
    %cst_28 = arith.constant dense<0.000000e+00> : vector<16xf32>
    %102 = vector.multi_reduction <add>, %101, %cst_28 [1] : vector<16x32xf32> to vector<16xf32>
    %103 = vector.shape_cast %102 : vector<16xf32> to vector<16x1xf32>
    %cst_29 = arith.constant 3.200000e+01 : f32
    %104 = vector.broadcast %cst_29 : f32 to vector<16x1xf32>
    %105 = arith.divf %103, %104 : vector<16x1xf32>
    %106 = arith.mulf %101, %101 : vector<16x32xf32>
    %cst_30 = arith.constant dense<0.000000e+00> : vector<16xf32>
    %107 = vector.multi_reduction <add>, %106, %cst_30 [1] : vector<16x32xf32> to vector<16xf32>
    %108 = vector.shape_cast %107 : vector<16xf32> to vector<16x1xf32>
    %cst_31 = arith.constant 3.200000e+01 : f32
    %109 = vector.broadcast %cst_31 : f32 to vector<16x1xf32>
    %110 = arith.divf %108, %109 : vector<16x1xf32>
    %111 = arith.mulf %105, %105 : vector<16x1xf32>
    %112 = arith.subf %110, %111 : vector<16x1xf32>
    %113 = vector.broadcast %105 : vector<16x1xf32> to vector<16x32xf32>
    %114 = arith.subf %101, %113 : vector<16x32xf32>
    %cst_32 = arith.constant 9.99999974E-6 : f32
    %115 = vector.broadcast %cst_32 : f32 to vector<16x1xf32>
    %116 = arith.addf %112, %115 : vector<16x1xf32>
    %117 = math.rsqrt %116 : vector<16x1xf32>
    %118 = vector.broadcast %117 : vector<16x1xf32> to vector<16x32xf32>
    %119 = arith.mulf %114, %118 : vector<16x32xf32>
    %120 = vector.broadcast %4 : vector<1x32xf32> to vector<16x32xf32>
    %121 = arith.mulf %119, %120 : vector<16x32xf32>
    %122 = vector.broadcast %5 : vector<1x32xf32> to vector<16x32xf32>
    %123 = arith.addf %121, %122 : vector<16x32xf32>
    %124 = arith.truncf %123 : vector<16x32xf32> to vector<16x32xbf16>
    %cst_33 = arith.constant dense<0.000000e+00> : vector<16x128xf32>
    %125 = tpu.matmul %124, %12, %cst_33 {dimension_numbers = #tpu.dot_dimension_numbers<[1], [0], [0], [1], [0, 0, 1, 1], [], []>} : vector<16x32xbf16>, vector<32x128xbf16>, vector<16x128xf32> -> vector<16x128xf32>
    %126 = vector.broadcast %2 : vector<1x128xf32> to vector<16x128xf32>
    %127 = arith.addf %125, %126 : vector<16x128xf32>
    %cst_34 = arith.constant 0.000000e+00 : f32
    %128 = vector.broadcast %cst_34 : f32 to vector<16x128xf32>
    %129 = arith.maximumf %127, %128 : vector<16x128xf32>
    %130 = arith.truncf %129 : vector<16x128xf32> to vector<16x128xbf16>
    %c0_35 = arith.constant 0 : index
    %c0_36 = arith.constant 0 : index
    %131 = vector.load %arg5[%c0_35, %c0_36] : memref<128x32xbf16, #tpu.memory_space<vmem>>, vector<128x32xbf16>
    %cst_37 = arith.constant dense<0.000000e+00> : vector<16x32xf32>
    %132 = tpu.matmul %130, %131, %cst_37 {dimension_numbers = #tpu.dot_dimension_numbers<[1], [0], [0], [1], [0, 0, 1, 1], [], []>} : vector<16x128xbf16>, vector<128x32xbf16>, vector<16x32xf32> -> vector<16x32xf32>
    %133 = vector.broadcast %6 : vector<1x32xf32> to vector<16x32xf32>
    %134 = arith.addf %132, %133 : vector<16x32xf32>
    %135 = arith.addf %123, %134 : vector<16x32xf32>
    %cst_38 = arith.constant dense<0.000000e+00> : vector<16xf32>
    %136 = vector.multi_reduction <add>, %135, %cst_38 [1] : vector<16x32xf32> to vector<16xf32>
    %137 = vector.shape_cast %136 : vector<16xf32> to vector<16x1xf32>
    %cst_39 = arith.constant 3.200000e+01 : f32
    %138 = vector.broadcast %cst_39 : f32 to vector<16x1xf32>
    %139 = arith.divf %137, %138 : vector<16x1xf32>
    %140 = arith.mulf %135, %135 : vector<16x32xf32>
    %cst_40 = arith.constant dense<0.000000e+00> : vector<16xf32>
    %141 = vector.multi_reduction <add>, %140, %cst_40 [1] : vector<16x32xf32> to vector<16xf32>
    %142 = vector.shape_cast %141 : vector<16xf32> to vector<16x1xf32>
    %cst_41 = arith.constant 3.200000e+01 : f32
    %143 = vector.broadcast %cst_41 : f32 to vector<16x1xf32>
    %144 = arith.divf %142, %143 : vector<16x1xf32>
    %145 = arith.mulf %139, %139 : vector<16x1xf32>
    %146 = arith.subf %144, %145 : vector<16x1xf32>
    %147 = vector.broadcast %139 : vector<16x1xf32> to vector<16x32xf32>
    %148 = arith.subf %135, %147 : vector<16x32xf32>
    %cst_42 = arith.constant 9.99999974E-6 : f32
    %149 = vector.broadcast %cst_42 : f32 to vector<16x1xf32>
    %150 = arith.addf %146, %149 : vector<16x1xf32>
    %151 = math.rsqrt %150 : vector<16x1xf32>
    %152 = vector.broadcast %151 : vector<16x1xf32> to vector<16x32xf32>
    %153 = arith.mulf %148, %152 : vector<16x32xf32>
    %154 = vector.broadcast %7 : vector<1x32xf32> to vector<16x32xf32>
    %155 = arith.mulf %153, %154 : vector<16x32xf32>
    %156 = vector.broadcast %8 : vector<1x32xf32> to vector<16x32xf32>
    %157 = arith.addf %155, %156 : vector<16x32xf32>
    %c0_43 = arith.constant 0 : index
    %c0_44 = arith.constant 0 : index
    %158 = vector.load %arg7[%c0_43, %c0_44] : memref<16x32xf32, #tpu.memory_space<vmem>>, vector<16x32xf32>
    tpu.vector_store %arg7[%c0_43, %c0_44], %157 {strides = array<i32>} : memref<16x32xf32, #tpu.memory_space<vmem>>, vector<16x32xf32>,
    return
  }
  func.func @transform_0(%arg0: i32) -> (i32, i32) {
    %c0_i32 = arith.constant 0 : i32
    %c0_i32_0 = arith.constant 0 : i32
    return %arg0, %c0_i32 : i32, i32
  }
  func.func @transform_1(%arg0: i32) -> (i32, i32) {
    %c0_i32 = arith.constant 0 : i32
    %c0_i32_0 = arith.constant 0 : i32
    return %arg0, %c0_i32 : i32, i32
  }
  func.func @transform_2(%arg0: i32) -> (i32, i32) {
    %c0_i32 = arith.constant 0 : i32
    %c0_i32_0 = arith.constant 0 : i32
    %c0_i32_1 = arith.constant 0 : i32
    return %c0_i32, %c0_i32_0 : i32, i32
  }
  func.func @transform_3(%arg0: i32) -> (i32, i32) {
    %c0_i32 = arith.constant 0 : i32
    %c0_i32_0 = arith.constant 0 : i32
    %c0_i32_1 = arith.constant 0 : i32
    return %c0_i32, %c0_i32_0 : i32, i32
  }
  func.func @transform_4(%arg0: i32) -> (i32, i32) {
    %c0_i32 = arith.constant 0 : i32
    %c0_i32_0 = arith.constant 0 : i32
    %c0_i32_1 = arith.constant 0 : i32
    return %c0_i32, %c0_i32_0 : i32, i32
  }
  func.func @transform_5(%arg0: i32) -> (i32, i32) {
    %c0_i32 = arith.constant 0 : i32
    %c0_i32_0 = arith.constant 0 : i32
    %c0_i32_1 = arith.constant 0 : i32
    return %c0_i32, %c0_i32_0 : i32, i32
  }
  func.func @transform_6(%arg0: i32) -> (i32, i32) {
    %c0_i32 = arith.constant 0 : i32
    %c0_i32_0 = arith.constant 0 : i32
    return %arg0, %c0_i32 : i32, i32
  }
}

</mosaic_0001>

<bundles_post_ra>
// kernel: encoder_forward.1
= control target key start
LH: loop header
LB: loop body
LE: loop exit
PB: predicated region body
PF: predicated region fallthrough
CT: control target
= control target key end

     0   :  { %v861_v2 = vmov 0   ;;  %s1094_s0 = inlined_call_operand.vmem [shape: s32[16,1], index: 0, kind: input, shape index: {}]   ;;  %s1095_s1 = inlined_call_operand.vmem [shape: f32[16,16], index: 1, kind: input, shape index: {}]   ;;  %s1096_s2 = inlined_call_operand.vmem [shape: bf16[50,32], index: 2, kind: input, shape index: {}]   ;;  %s1097_s3 = inlined_call_operand.vmem [shape: bf16[96,128], index: 3, kind: input, shape index: {}]   ;;  %s1098_s4 = inlined_call_operand.vmem [shape: bf16[128,32], index: 4, kind: input, shape index: {}]   ;;  %s1099_s5 = inlined_call_operand.vmem [shape: f32[24,128], index: 5, kind: input, shape index: {}]   ;;  %s1100_s6 = inlined_call_operand.hbm [shape: f32[16,32], index: 6, kind: output, shape index: {}]  }
   0x1   :  { %v40_v0 = vld [vmem:[%s1094_s0] sm:$0xff]  ;;  %v63_v1 = vld [vmem:[%s1096_s2 + $0x18] sm:$0x1]  ;;  %792 = vset.pattern.permute.xlu0 %v861_v2 }
   0x2   :  { %v77_v3 = vunpack.c.l.b16 %v63_v1 }
   0x3   :  { %11 = vsyncpa [#allocation3], 0  ;;  %45 = vperm.xlu0 %792, %v40_v0   ;;  %vm89_vm0 = vcmask 1040384   ;;  %v41_v6 = vld [vmem:[%s1094_s0 + $0x8] sm:$0xff]  ;;  %v774_v7 = vld [vmem:[%s1096_s2 + $0x10] sm:$0xff]  ;;  %v42_v10 = vlaneseq  ;;  %v862_v14 = vmov 0.0  }
   0x4   :  { %v81_v4 = vpack.c.b16 %v77_v3, %v77_v3  ;;  %v773_v8 = vld [vmem:[%s1096_s2 + $0x8] sm:$0xff]  ;;  %v772_v9 = vld [vmem:[%s1096_s2] sm:$0xff]  ;;  %vm85_vm3 = vcmask 408576   ;;  %v769_v20 = vld [vmem:[%s1097_s3 + $0x18] sm:$0xff]  ;;  %vm120_vm4 = vcmask 261120   ;;  %s863_s19 = smov 96  }
   0x5   :  { %v43_v12 = vand.u32 127, %v42_v10  ;;  %v767_v18 = vld [vmem:[%s1097_s3 + $0x8] sm:$0xff]  ;;  %v766_v19 = vld [vmem:[%s1097_s3] sm:$0xff]  ;;  %v768_v21 = vld [vmem:[%s1097_s3 + $0x10] sm:$0xff]  ;;  %vm192_vm5 = vcmask 130048   ;;  %s865_s24 = smov 64  }
   0x6   :  { %v91_v5 = vsel %vm89_vm0, %v81_v4, 0  ;;  %130 = vmatpush.bf16.msra.mxu2 %v767_v18  ;;  %v25_v23 = vld [vmem:[%s1099_s5] sm:$0xff]  ;;  %v26_v24 = vld [vmem:[%s1099_s5 + $0x8] sm:$0xff]  ;;  %s672_s22 = sshll.u32 %s1100_s6, 4  ;;  %s868_s23 = smov 128   ;;  %s673_s22 = int_to_ptr.hbm [resolvable:$true] %s672_s22 }
   0x7   :  { %97 = vmatpush.bf16.msra.mxu0 %v91_v5  ;;  %v964_v45 = vld [vmem:[%s1095_s1] sm:$0xff]  ;;  %v972_v51 = vld [vmem:[%s1095_s1 + $0x8] sm:$0xff]  ;;  %s864_s1 = smov 32  }
   0xa   :  { %131 = vmatpush.bf16.msra.mxu2 %v766_v19 }
   0xb   :  { %48 = vperm.xlu0 %792, %v41_v6   ;;  %98 = vmatpush.bf16.msra.mxu0 %v774_v7 }
   0xe   :  { %158 = vmatpush.bf16.msrb.mxu2 %v769_v20 }
   0xf   :  { %99 = vmatpush.bf16.msra.mxu0 %v773_v8 }
  0x12   :  { %159 = vmatpush.bf16.msrb.mxu2 %v768_v21 }
  0x13   :  { %100 = vmatpush.bf16.msra.mxu0 %v772_v9 }
  0x75   :  { %v46_v11 = vpop.permute.xlu0 %45 }
  0x76   :  { %vm50_vm1 = vcmp.eq.s32.totalorder %v43_v12, %v46_v11 }
  0x77   :  { %v684_v15 = vsel %vm50_vm1, 1.0, %v862_v14 }
  0x7d   :  { %v49_v13 = vpop.permute.xlu0 %48 }
  0x7e   :  { %vm51_vm2 = vcmp.eq.s32.totalorder %v43_v12, %v49_v13 }
  0x7f   :  { %v685_v16 = vsel %vm51_vm2, 1.0, %v862_v14 }
  0x80   :  { %v56_v17 = vpack.c.bf16 %v685_v16, %v684_v15 }
  0x82   :  { %698 = vmatmul.msk.bf16.vlgmr.msra.gmra.mxu0 %vm85_vm3, %v56_v17 }
  0xff   :  { %v102_v22 = vpop.f32.mrf.mxu0 }
 0x100   :  { %v941_v26 = vadd.f32 %v102_v22, %v25_v23 }
 0x107   :  { %v104_v25 = vpop.f32.mrf.mxu0 }
 0x108   :  { %v943_v27 = vadd.f32 %v104_v25, %v26_v24 }
 0x10a   :  { %v107_v28 = vpack.c.bf16 %v943_v27, %v941_v26 }
 0x10c   :  { %707 = vmatmul.msk.bf16.vlgmr.msra.gmra.mxu2 %vm120_vm4, %v107_v28  ;;  %v949_v29 = vsel %vm120_vm4, %v107_v28, 0 }
 0x10d   :  { %185 = vmatpush.bf16.xpose.msra.mxu3 %v949_v29  ;;  %228 = vmatpush.bf16.xpose.msra.mxu1 %v949_v29 }
 0x10e   :  { %313 = vmatpush.bf16.xpose.msrb.mxu0 %v949_v29 }
 0x11c   :  { %716 = vmatmul.msk.bf16.vlgmr.msrb.gmra.mxu2 %vm120_vm4, %v107_v28 }
 0x18f   :  { %v133_v30 = vpop.f32.mrf.mxu2 }
 0x190   :  { %v138_v31 = vpack.c.bf16 %v133_v30, %v133_v30 }
 0x192   :  { %v172_v34 = vunpack.c.l.b16 %v138_v31 }
 0x197   :  { %v135_v32 = vpop.f32.mrf.mxu2 }
 0x198   :  { %v139_v33 = vpack.c.bf16 %v135_v32, %v135_v32 }
 0x19a   :  { %v173_v35 = vunpack.c.l.b16 %v139_v33 }
 0x19c   :  { %v174_v36 = vpack.c.b16 %v173_v35, %v172_v34 }
 0x19e   :  { %216 = vrot.lane.b32.xlu1 %v174_v36, %s863_s19  ;;  %717 = vmatmul.msk.bf16.vlgmr.msra.gmra.mxu3 %vm120_vm4, %v174_v36 }
 0x19f   :  { %v161_v37 = vpop.f32.mrf.mxu2 }
 0x1a0   :  { %v166_v38 = vpack.c.bf16 %v161_v37, %v161_v37 }
 0x1a2   :  { %v260_v41 = vunpack.c.l.b16 %v166_v38 }
 0x1a7   :  { %v163_v39 = vpop.f32.mrf.mxu2 }
 0x1a8   :  { %v167_v40 = vpack.c.bf16 %v163_v39, %v163_v39 }
 0x1aa   :  { %v261_v42 = vunpack.c.l.b16 %v167_v40 }
 0x1ac   :  { %v957_v43 = vpack.c.b16 %v261_v42, %v260_v41 }
 0x1ae   :  { %294 = vmatpush.bf16.msrb.mxu3 %v957_v43 }
 0x210   :  { %v217_v44 = vpop.permute.xlu1 %216 }
 0x211   :  { %718 = vmatmul.msk.bf16.vlgmr.msra.gmra.mxu1 %vm120_vm4, %v217_v44 }
 0x221   :  { %v187_v49 = vpop.f32.mrf.mxu3 }
 0x222   :  { %v188_v50 = vadd.f32 %v187_v49, %v964_v45 }
 0x224   :  { %v193_v55 = vsel %vm192_vm5, %v188_v50, -inf }
 0x229   :  { %v189_v2 = vpop.f32.mrf.mxu3 }
 0x22a   :  { %v190_v3 = vadd.f32 %v189_v2, %v972_v51 }
 0x22c   :  { %v196_v4 = vsel %vm192_vm5, %v190_v3, -inf }
 0x28e   :  { %v230_v46 = vpop.f32.mrf.mxu1 }
 0x28f   :  { %v231_v47 = vadd.f32 %v230_v46, %v964_v45 }
 0x291   :  { %v235_v48 = vsel %vm192_vm5, %v231_v47, -inf }
 0x292   :  { %236 = vmax.xlane.f32.xlu1 %v235_v48 }
 0x296   :  { %v232_v52 = vpop.f32.mrf.mxu1 }
 0x297   :  { %v233_v53 = vadd.f32 %v232_v52, %v972_v51 }
 0x299   :  { %v238_v54 = vsel %vm192_vm5, %v233_v53, -inf }
 0x29a   :  { %239 = vmax.xlane.f32.xlu2 %v238_v54  ;;  %194 = vmax.xlane.f32.xlu1 %v193_v55 }
 0x305   :  { %v237_v56 = vpop.xlane.xlu1 %236 }
 0x306   :  { %v241_v57 = vsub.f32 %v231_v47, %v237_v56 }
 0x308   :  { %v243_v58 = vmul.f32 1.442695, %v241_v57 }
 0x30a   :  { %793 = vpow2.f32 %v243_v58 }
 0x30d   :  { %v240_v59 = vpop.xlane.xlu2 %239  ;;  %v195_v21 = vpop.xlane.xlu1 %194 }
 0x30e   :  { %v242_v60 = vsub.f32 %v233_v53, %v240_v59  ;;  %v199_v23 = vsub.f32 %v188_v50, %v195_v21 }
 0x310   :  { %v794_v61 = vpop.eup %793  ;;  %v245_v62 = vmul.f32 1.442695, %v242_v60  ;;  %v201_v24 = vmul.f32 1.442695, %v199_v23 }
 0x311   :  { %v247_v63 = vsel %vm192_vm5, %v794_v61, 0.0 }
 0x312   :  { %795 = vpow2.f32 %v245_v62  ;;  %248 = vadd.xlane.f32.xlu2 %v247_v63 }
 0x318   :  { %v796_v0 = vpop.eup %795 }
 0x319   :  { %v250_v1 = vsel %vm192_vm5, %v796_v0, 0.0 }
 0x31a   :  { %251 = vadd.xlane.f32.xlu0 %v250_v1 }
 0x32a   :  { %263 = vrot.lane.b32.xlu2 %v957_v43, %s863_s19 }
 0x332   :  { %365 = vrot.lane.b32.xlu2 %v174_v36, %s864_s1 }
 0x33a   :  { %301 = vrot.lane.b32.xlu2 %v174_v36, %s865_s24 }
 0x363   :  { %197 = vmax.xlane.f32.xlu2 %v196_v4 }
 0x37b   :  { %407 = vrot.lane.b32.xlu2 %v957_v43, %s864_s1  ;;  %s869_s1 = smov 8  }
 0x385   :  { %v249_v5 = vpop.xlane.xlu2 %248 }
 0x386   :  { %797 = vrcp.f32 %v249_v5 }
 0x38c   :  { %v798_v8 = vpop.eup %797 }
 0x38d   :  { %v252_v6 = vpop.xlane.xlu0 %251  ;;  %v264_v7 = vpop.permute.xlu2 %263  ;;  %v255_v10 = vmul.f32 %v798_v8, %v794_v61 }
 0x38e   :  { %799 = vrcp.f32 %v252_v6  ;;  %276 = vmatpush.bf16.msra.mxu2 %v264_v7 }
 0x38f   :  { %801 = vpow2.f32 %v201_v24  ;;  %v1015_v24 = vld [vmem:[%s1099_s5 + $0x10] sm:$0xff] }
 0x392   :  { %377 = vmatpush.bf16.xpose.msrb.mxu2 %v949_v29 }
 0x394   :  { %v800_v9 = vpop.eup %799 }
 0x395   :  { %v256_v11 = vmul.f32 %v800_v9, %v796_v0  ;;  %v366_v12 = vpop.permute.xlu2 %365  ;;  %v802_v30 = vpop.eup %801 }
 0x396   :  { %v205_v35 = vsel %vm192_vm5, %v802_v30, 0.0 }
 0x397   :  { %v257_v13 = vpack.c.bf16 %v256_v11, %v255_v10 }
 0x399   :  { %719 = vmatmul.msk.bf16.vlgmr.msra.gmra.mxu2 %vm192_vm5, %v257_v13 }
 0x39d   :  { %v302_v14 = vpop.permute.xlu2 %301 }
 0x39e   :  { %721 = vmatmul.msk.bf16.vlgmr.msrb.gmra.mxu0 %vm120_vm4, %v302_v14 }
 0x3a9   :  { %723 = vmatmul.msk.bf16.vlgmr.msrb.gmra.mxu2 %vm120_vm4, %v366_v12 }
 0x3d6   :  { %v198_v15 = vpop.xlane.xlu2 %197 }
 0x3d7   :  { %v200_v33 = vsub.f32 %v190_v3, %v198_v15 }
 0x3d9   :  { %v203_v37 = vmul.f32 1.442695, %v200_v33 }
 0x3db   :  { %803 = vpow2.f32 %v203_v37 }
 0x3de   :  { %v408_v16 = vpop.permute.xlu2 %407 }
 0x3df   :  { %420 = vmatpush.bf16.msra.mxu3 %v408_v16 }
 0x3e1   :  { %v804_v40 = vpop.eup %803 }
 0x3e2   :  { %v208_v41 = vsel %vm192_vm5, %v804_v40, 0.0 }
 0x41b   :  { %v315_v17 = vpop.f32.mrf.mxu0 }
 0x41c   :  { %v316_v18 = vadd.f32 %v315_v17, %v964_v45  ;;  %v990_v19 = vpop.f32.mrf.mxu2 }
 0x41e   :  { %v320_v20 = vsel %vm192_vm5, %v316_v18, -inf }
 0x41f   :  { %321 = vmax.xlane.f32.xlu0 %v320_v20 }
 0x423   :  { %v317_v36 = vpop.f32.mrf.mxu0 }
 0x424   :  { %v993_v22 = vpop.f32.mrf.mxu2  ;;  %v318_v38 = vadd.f32 %v317_v36, %v972_v51 }
 0x426   :  { %v323_v39 = vsel %vm192_vm5, %v318_v38, -inf }
 0x42c   :  { %v379_v25 = vpop.f32.mrf.mxu2 }
 0x42d   :  { %v380_v28 = vadd.f32 %v379_v25, %v964_v45 }
 0x42f   :  { %v384_v29 = vsel %vm192_vm5, %v380_v28, -inf }
 0x430   :  { %385 = vmax.xlane.f32.xlu0 %v384_v29 }
 0x434   :  { %v381_v31 = vpop.f32.mrf.mxu2 }
 0x435   :  { %v382_v32 = vadd.f32 %v381_v31, %v972_v51  ;;  %v429_v31 = vperm.slane %v1015_v24, 1 }
 0x437   :  { %v387_v34 = vsel %vm192_vm5, %v382_v32, -inf }
 0x438   :  { %388 = vmax.xlane.f32.xlu1 %v387_v34  ;;  %206 = vadd.xlane.f32.xlu0 %v205_v35 }
 0x440   :  { %324 = vmax.xlane.f32.xlu1 %v323_v39 }
 0x448   :  { %209 = vadd.xlane.f32.xlu1 %v208_v41 }
 0x492   :  { %v322_v42 = vpop.xlane.xlu0 %321 }
 0x493   :  { %v326_v44 = vsub.f32 %v316_v18, %v322_v42 }
 0x495   :  { %v328_v45 = vmul.f32 1.442695, %v326_v44 }
 0x497   :  { %805 = vpow2.f32 %v328_v45 }
 0x49d   :  { %v806_v46 = vpop.eup %805 }
 0x49e   :  { %v332_v47 = vsel %vm192_vm5, %v806_v46, 0.0 }
 0x49f   :  { %333 = vadd.xlane.f32.xlu0 %v332_v47 }
 0x4a3   :  { %v386_v48 = vpop.xlane.xlu0 %385 }
 0x4a4   :  { %v390_v49 = vsub.f32 %v380_v28, %v386_v48 }
 0x4a6   :  { %v392_v50 = vmul.f32 1.442695, %v390_v49 }
 0x4a8   :  { %807 = vpow2.f32 %v392_v50 }
 0x4ab   :  { %v389_v51 = vpop.xlane.xlu1 %388  ;;  %v207_v60 = vpop.xlane.xlu0 %206 }
 0x4ac   :  { %v391_v52 = vsub.f32 %v382_v32, %v389_v51 }
 0x4ae   :  { %v808_v53 = vpop.eup %807  ;;  %v394_v54 = vmul.f32 1.442695, %v391_v52 }
 0x4af   :  { %v396_v55 = vsel %vm192_vm5, %v808_v53, 0.0 }
 0x4b0   :  { %809 = vpow2.f32 %v394_v54  ;;  %397 = vadd.xlane.f32.xlu0 %v396_v55  ;;  %v771_v55 = vld [vmem:[%s1097_s3 + $0x28] sm:$0xff] }
 0x4b1   :  { %518 = vmatpush.bf16.msra.mxu0 %v771_v55 }
 0x4b3   :  { %v325_v56 = vpop.xlane.xlu1 %324 }
 0x4b4   :  { %v327_v57 = vsub.f32 %v318_v38, %v325_v56 }
 0x4b6   :  { %v810_v58 = vpop.eup %809  ;;  %v330_v59 = vmul.f32 1.442695, %v327_v57 }
 0x4b7   :  { %v399_v61 = vsel %vm192_vm5, %v810_v58, 0.0 }
 0x4b8   :  { %811 = vpow2.f32 %v330_v59  ;;  %400 = vadd.xlane.f32.xlu1 %v399_v61  ;;  %v770_v59 = vld [vmem:[%s1097_s3 + $0x20] sm:$0xff] }
 0x4b9   :  { %813 = vrcp.f32 %v207_v60  ;;  %519 = vmatpush.bf16.msra.mxu0 %v770_v59 }
 0x4bb   :  { %v210_v62 = vpop.xlane.xlu1 %209 }
 0x4bc   :  { %815 = vrcp.f32 %v210_v62 }
 0x4be   :  { %v812_v63 = vpop.eup %811 }
 0x4bf   :  { %v335_v0 = vsel %vm192_vm5, %v812_v63, 0.0  ;;  %v814_v1 = vpop.eup %813 }
 0x4c0   :  { %336 = vadd.xlane.f32.xlu1 %v335_v0  ;;  %v213_v3 = vmul.f32 %v814_v1, %v802_v30 }
 0x4c2   :  { %v816_v2 = vpop.eup %815 }
 0x4c3   :  { %v214_v4 = vmul.f32 %v816_v2, %v804_v40  ;;  %v782_v2 = vld [vmem:[%s1098_s4 + $0x38] sm:$0xff] }
 0x4c4   :  { %343 = vrot.lane.b32.xlu0 %v957_v43, %s865_s24 }
 0x4c5   :  { %v215_v5 = vpack.c.bf16 %v214_v4, %v213_v3  ;;  %v781_v4 = vld [vmem:[%s1098_s4 + $0x30] sm:$0xff] }
 0x4c7   :  { %720 = vmatmul.msk.bf16.vlgmr.msrb.gmra.mxu3 %vm192_vm5, %v215_v5 }
 0x512   :  { %v334_v6 = vpop.xlane.xlu0 %333 }
 0x523   :  { %v398_v7 = vpop.xlane.xlu0 %397 }
 0x524   :  { %817 = vrcp.f32 %v398_v7  ;;  %v780_v7 = vld [vmem:[%s1098_s4 + $0x28] sm:$0xff] }
 0x52a   :  { %v818_v9 = vpop.eup %817 }
 0x52b   :  { %v401_v8 = vpop.xlane.xlu1 %400  ;;  %v404_v11 = vmul.f32 %v818_v9, %v808_v53 }
 0x52c   :  { %819 = vrcp.f32 %v401_v8 }
 0x52d   :  { %821 = vrcp.f32 %v334_v6 }
 0x532   :  { %v820_v10 = vpop.eup %819 }
 0x533   :  { %v405_v12 = vmul.f32 %v820_v10, %v810_v58  ;;  %v337_v13 = vpop.xlane.xlu1 %336  ;;  %v822_v43 = vpop.eup %821  ;;  %v779_v10 = vld [vmem:[%s1098_s4 + $0x20] sm:$0xff] }
 0x534   :  { %823 = vrcp.f32 %v337_v13  ;;  %v340_v17 = vmul.f32 %v822_v43, %v806_v46  ;;  %v866_v46 = vmov 32.0  }
 0x535   :  { %v406_v14 = vpack.c.bf16 %v405_v12, %v404_v11  ;;  %825 = vrcp.f32 %v866_v46 }
 0x536   :  { %v344_v15 = vpop.permute.xlu0 %343 }
 0x537   :  { %356 = vmatpush.bf16.msrb.mxu1 %v344_v15  ;;  %724 = vmatmul.msk.bf16.vlgmr.msra.gmra.mxu3 %vm192_vm5, %v406_v14 }
 0x53a   :  { %v824_v16 = vpop.eup %823 }
 0x53b   :  { %v341_v18 = vmul.f32 %v824_v16, %v812_v63  ;;  %594 = vmatpush.bf16.msra.mxu1 %v782_v2 }
 0x53d   :  { %v342_v20 = vpack.c.bf16 %v341_v18, %v340_v17 }
 0x53f   :  { %722 = vmatmul.msk.bf16.vlgmr.msrb.gmra.mxu1 %vm192_vm5, %v342_v20 }
 0x540   :  { %595 = vmatpush.bf16.msra.mxu1 %v781_v4 }
 0x544   :  { %596 = vmatpush.bf16.msra.mxu1 %v780_v7 }
 0x548   :  { %597 = vmatpush.bf16.msra.mxu1 %v779_v10 }
 0x54a   :  { %v296_v21 = vpop.f32.mrf.mxu3 }
 0x54b   :  { %v297_v25 = vadd.f32 %v296_v21, %v990_v19  ;;  %v489_v21 = vperm.slane %v1015_v24, 2 }
 0x552   :  { %v298_v23 = vpop.f32.mrf.mxu3 }
 0x553   :  { %v299_v34 = vadd.f32 %v298_v23, %v993_v22 }
 0x5ba   :  { %v422_v28 = vpop.f32.mrf.mxu3 }
 0x5bc   :  { %v358_v29 = vpop.f32.mrf.mxu1 }
 0x5bd   :  { %v363_v30 = vadd.f32 %v358_v29, %v297_v25 }
 0x5bf   :  { %v427_v32 = vadd.f32 %v422_v28, %v363_v30 }
 0x5c1   :  { %v430_v33 = vadd.f32 %v429_v31, %v427_v32  ;;  %v492_v32 = vperm.slane %v1015_v24, 3 }
 0x5c2   :  { %v424_v39 = vpop.f32.mrf.mxu3 }
 0x5c3   :  { %v1021_v35 = vadd.f32 %v430_v33, %v941_v26 }
 0x5c4   :  { %v360_v36 = vpop.f32.mrf.mxu1 }
 0x5c5   :  { %v364_v37 = vadd.f32 %v360_v36, %v299_v34  ;;  %v434_v38 = vsel %vm120_vm4, %v1021_v35, 0.0  ;;  %v449_v44 = vmul.f32 %v1021_v35, %v1021_v35 }
 0x5c6   :  { %435 = vadd.xlane.f32.xlu1 %v434_v38  ;;  %v778_v38 = vld [vmem:[%s1098_s4 + $0x18] sm:$0xff] }
 0x5c7   :  { %v428_v19 = vadd.f32 %v424_v39, %v364_v37  ;;  %v451_v45 = vsel %vm120_vm4, %v449_v44, 0.0  ;;  %598 = vmatpush.bf16.msra.mxu1 %v778_v38  ;;  %v776_v39 = vld [vmem:[%s1098_s4 + $0x8] sm:$0xff] }
 0x5c9   :  { %v431_v40 = vadd.f32 %v429_v31, %v428_v19  ;;  %v775_v19 = vld [vmem:[%s1098_s4] sm:$0xff] }
 0x5cb   :  { %v1026_v41 = vadd.f32 %v431_v40, %v943_v27  ;;  %v826_v27 = vpop.eup %825 }
 0x5cc   :  { %v441_v47 = vmul.f32 32.0, %v826_v27  ;;  %vm445_vm6 = vweird.f32 %v826_v27 }
 0x5cd   :  { %v437_v42 = vsel %vm120_vm4, %v1026_v41, 0.0  ;;  %v450_v22 = vmul.f32 %v1026_v41, %v1026_v41 }
 0x5ce   :  { %438 = vadd.xlane.f32.xlu1 %v437_v42  ;;  %v442_v48 = vsub.f32 1.0, %v441_v47 }
 0x5cf   :  { %v454_v26 = vsel %vm120_vm4, %v450_v22, 0.0 }
 0x5d0   :  { %455 = vadd.xlane.f32.xlu0 %v454_v26  ;;  %v443_v49 = vmul.f32 %v826_v27, %v442_v48 }
 0x5d2   :  { %v444_v51 = vadd.f32 %v826_v27, %v443_v49 }
 0x5d4   :  { %v1036_v52 = vsel %vm445_vm6, %v826_v27, %v444_v51  ;;  %v545_v27 = vperm.slane %v1015_v24, 4 }
 0x5d6   :  { %452 = vadd.xlane.f32.xlu1 %v451_v45 }
 0x639   :  { %v436_v50 = vpop.xlane.xlu1 %435 }
 0x63a   :  { %v447_v60 = vmul.f32 %v1036_v52, %v436_v50 }
 0x63c   :  { %v459_v0 = vmul.f32 %v447_v60, %v447_v60  ;;  %v463_v28 = vsub.f32 %v1021_v35, %v447_v60  ;;  %v777_v35 = vld [vmem:[%s1098_s4 + $0x10] sm:$0xff]  ;;  %s867_s4 = smov [#allocation2]  }
 0x63d   :  { %599 = vmatpush.bf16.msra.mxu1 %v777_v35  ;;  %s670_s19 = sshll.u32 %s867_s4, 4  ;;  %s671_s19 = int_to_ptr.vmem [resolvable:$true] %s670_s19 }
 0x641   :  { %v439_v53 = vpop.xlane.xlu1 %438  ;;  %600 = vmatpush.bf16.msra.mxu1 %v776_v39 }
 0x642   :  { %v448_v54 = vmul.f32 %v1036_v52, %v439_v53 }
 0x643   :  { %v456_v56 = vpop.xlane.xlu0 %455 }
 0x644   :  { %v460_v57 = vmul.f32 %v448_v54, %v448_v54  ;;  %v458_v58 = vmul.f32 %v456_v56, %v1036_v52  ;;  %v464_v18 = vsub.f32 %v1026_v41, %v448_v54  ;;  %v496_v41 = vperm.slane %v1015_v24, 0 }
 0x645   :  { %601 = vmatpush.bf16.msra.mxu1 %v775_v19 }
 0x646   :  { %v462_v61 = vsub.f32 %v458_v58, %v460_v57 }
 0x648   :  { %v466_v62 = vadd.f32 1e-05, %v462_v61 }
 0x649   :  { %v453_v63 = vpop.xlane.xlu1 %452 }
 0x64a   :  { %827 = vrsqrt.f32 %v466_v62  ;;  %v457_v1 = vmul.f32 %v453_v63, %v1036_v52  ;;  %vm483_vm8 = vweird.f32 %v466_v62 }
 0x64c   :  { %v461_v3 = vsub.f32 %v457_v1, %v459_v0 }
 0x64e   :  { %v465_v5 = vadd.f32 1e-05, %v461_v3 }
 0x650   :  { %v828_v6 = vpop.eup %827  ;;  %829 = vrsqrt.f32 %v465_v5  ;;  %vm473_vm11 = vweird.f32 %v465_v5 }
 0x651   :  { %v478_v8 = vmul.f32 %v828_v6, %v466_v62  ;;  %vm484_vm7 = vweird.f32 %v828_v6 }
 0x652   :  { %vm485_vm9 = vmor %vm483_vm8, %vm484_vm7 }
 0x653   :  { %v479_v9 = vmul.f32 %v828_v6, %v478_v8 }
 0x655   :  { %v480_v11 = vmul.f32 0.5, %v479_v9 }
 0x656   :  { %v830_v12 = vpop.eup %829 }
 0x657   :  { %v481_v13 = vsub.f32 1.5, %v480_v11  ;;  %v468_v14 = vmul.f32 %v830_v12, %v465_v5  ;;  %vm474_vm10 = vweird.f32 %v830_v12 }
 0x658   :  { %vm475_vm12 = vmor %vm473_vm11, %vm474_vm10 }
 0x659   :  { %v482_v15 = vmul.f32 %v828_v6, %v481_v13  ;;  %v469_v43 = vmul.f32 %v830_v12, %v468_v14 }
 0x65b   :  { %v486_v16 = vsel %vm485_vm9, %v828_v6, %v482_v15  ;;  %v470_v17 = vmul.f32 0.5, %v469_v43 }
 0x65c   :  { %v488_v23 = vmul.f32 %v486_v16, %v464_v18  ;;  %v658_v16 = vperm.slane %v1015_v24, 5 }
 0x65d   :  { %v471_v20 = vsub.f32 1.5, %v470_v17 }
 0x65e   :  { %v491_v30 = vmul.f32 %v489_v21, %v488_v23 }
 0x65f   :  { %v472_v25 = vmul.f32 %v830_v12, %v471_v20  ;;  %v661_v20 = vperm.slane %v1015_v24, 6 }
 0x660   :  { %v494_v36 = vadd.f32 %v492_v32, %v491_v30 }
 0x661   :  { %v476_v29 = vsel %vm475_vm12, %v830_v12, %v472_v25 }
 0x662   :  { %v487_v31 = vmul.f32 %v476_v29, %v463_v28 }
 0x664   :  { %v490_v33 = vmul.f32 %v489_v21, %v487_v31 }
 0x666   :  { %v493_v34 = vadd.f32 %v492_v32, %v490_v33 }
 0x668   :  { %v495_v37 = vpack.c.bf16 %v494_v36, %v493_v34 }
 0x66a   :  { %733 = vmatmul.msk.bf16.vlgmr.msra.gmra.mxu0 %vm120_vm4, %v495_v37 }
 0x6e7   :  { %v521_v40 = vpop.f32.mrf.mxu0 }
 0x6e8   :  { %v522_v42 = vadd.f32 %v521_v40, %v496_v41 }
 0x6ea   :  { %v526_v44 = vmax.f32 %v522_v42, 0.0 }
 0x6ef   :  { %v523_v22 = vpop.f32.mrf.mxu0 }
 0x6f0   :  { %v524_v26 = vadd.f32 %v523_v22, %v496_v41 }
 0x6f2   :  { %v527_v45 = vmax.f32 %v524_v26, 0.0 }
 0x6f4   :  { %v528_v46 = vpack.c.bf16 %v527_v45, %v526_v44 }
 0x6f6   :  { %602 = vmatmul.bf16.vlgmr.msra.gmra.mxu1 %v528_v46 }
 0x773   :  { %v603_v47 = vpop.f32.mrf.mxu1 }
 0x774   :  { %v604_v48 = vadd.f32 %v603_v47, %v545_v27 }
 0x776   :  { %v608_v49 = vadd.f32 %v604_v48, %v493_v34 }
 0x778   :  { %v610_v50 = vsel %vm120_vm4, %v608_v49, 0.0  ;;  %v618_v51 = vmul.f32 %v608_v49, %v608_v49 }
 0x779   :  { %611 = vadd.xlane.f32.xlu2 %v610_v50 }
 0x77a   :  { %v620_v53 = vsel %vm120_vm4, %v618_v51, 0.0 }
 0x77b   :  { %v605_v54 = vpop.f32.mrf.mxu1  ;;  %621 = vadd.xlane.f32.xlu1 %v620_v53 }
 0x77c   :  { %v606_v55 = vadd.f32 %v605_v54, %v545_v27 }
 0x77e   :  { %v609_v56 = vadd.f32 %v606_v55, %v494_v36 }
 0x780   :  { %v613_v57 = vsel %vm120_vm4, %v609_v56, 0.0  ;;  %v619_v58 = vmul.f32 %v609_v56, %v609_v56 }
 0x782   :  { %v623_v59 = vsel %vm120_vm4, %v619_v58, 0.0 }
 0x783   :  { %614 = vadd.xlane.f32.xlu1 %v613_v57 }
 0x78b   :  { %624 = vadd.xlane.f32.xlu1 %v623_v59 }
 0x7ec   :  { %v612_v60 = vpop.xlane.xlu2 %611 }
 0x7ed   :  { %v616_v61 = vmul.f32 %v612_v60, %v1036_v52 }
 0x7ee   :  { %v622_v62 = vpop.xlane.xlu1 %621 }
 0x7ef   :  { %v628_v63 = vmul.f32 %v616_v61, %v616_v61  ;;  %v626_v0 = vmul.f32 %v622_v62, %v1036_v52  ;;  %v632_v43 = vsub.f32 %v608_v49, %v616_v61 }
 0x7f1   :  { %v630_v1 = vsub.f32 %v626_v0, %v628_v63 }
 0x7f3   :  { %v634_v2 = vadd.f32 1e-05, %v630_v1 }
 0x7f5   :  { %831 = vrsqrt.f32 %v634_v2  ;;  %vm642_vm14 = vweird.f32 %v634_v2 }
 0x7f6   :  { %v615_v3 = vpop.xlane.xlu1 %614 }
 0x7f7   :  { %v617_v5 = vmul.f32 %v615_v3, %v1036_v52 }
 0x7f9   :  { %v629_v9 = vmul.f32 %v617_v5, %v617_v5  ;;  %v633_v32 = vsub.f32 %v609_v56, %v617_v5 }
 0x7fb   :  { %v832_v4 = vpop.eup %831 }
 0x7fc   :  { %v637_v6 = vmul.f32 %v832_v4, %v634_v2  ;;  %vm643_vm13 = vweird.f32 %v832_v4 }
 0x7fd   :  { %vm644_vm15 = vmor %vm642_vm14, %vm643_vm13 }
 0x7fe   :  { %v638_v7 = vmul.f32 %v832_v4, %v637_v6  ;;  %v625_v8 = vpop.xlane.xlu1 %624 }
 0x7ff   :  { %v627_v10 = vmul.f32 %v625_v8, %v1036_v52 }
 0x800   :  { %v639_v11 = vmul.f32 0.5, %v638_v7 }
 0x801   :  { %v631_v12 = vsub.f32 %v627_v10, %v629_v9 }
 0x802   :  { %v640_v13 = vsub.f32 1.5, %v639_v11 }
 0x803   :  { %v635_v14 = vadd.f32 1e-05, %v631_v12 }
 0x804   :  { %v641_v15 = vmul.f32 %v832_v4, %v640_v13 }
 0x805   :  { %833 = vrsqrt.f32 %v635_v14  ;;  %vm652_vm1 = vweird.f32 %v635_v14 }
 0x806   :  { %v645_v17 = vsel %vm644_vm15, %v832_v4, %v641_v15 }
 0x807   :  { %v656_v18 = vmul.f32 %v645_v17, %v632_v43 }
 0x809   :  { %v659_v21 = vmul.f32 %v658_v16, %v656_v18 }
 0x80b   :  { %v834_v23 = vpop.eup %833  ;;  %v662_v25 = vadd.f32 %v661_v20, %v659_v21 }
 0x80c   :  { %v647_v52 = vmul.f32 %v834_v23, %v635_v14  ;;  %vm653_vm0 = vweird.f32 %v834_v23 }
 0x80d   :  { %664 = vst.msk [vmem:[#allocation2] sm:$0xff] %vm120_vm4, %v662_v25  ;;  %vm654_vm2 = vmor %vm652_vm1, %vm653_vm0 }
 0x80e   :  { %v648_v28 = vmul.f32 %v834_v23, %v647_v52 }
 0x810   :  { %v649_v29 = vmul.f32 0.5, %v648_v28 }
 0x812   :  { %v650_v30 = vsub.f32 1.5, %v649_v29 }
 0x814   :  { %v651_v31 = vmul.f32 %v834_v23, %v650_v30 }
 0x816   :  { %v655_v33 = vsel %vm654_vm2, %v834_v23, %v651_v31 }
 0x817   :  { %v657_v34 = vmul.f32 %v655_v33, %v633_v32 }
 0x819   :  { %v660_v24 = vmul.f32 %v658_v16, %v657_v34 }
 0x81b   :  { %v663_v36 = vadd.f32 %v661_v20, %v660_v24 }
 0x81d   :  { %665 = vst.msk [vmem:[#allocation2 + $0x8] sm:$0xff] %vm120_vm4, %v663_v36 }
 0x81e   :  { %678 = dma.vmem_to_hbm [thread:$0]  %s671_s19, 256, %s673_s22, [#allocation3], %s868_s23, %s868_s23, %s869_s1  }
 0x81f   :  { %859 = dma.done.wait [#allocation3], 256  }
 0x820   :  { %860 = vsyncadd [#allocation3], 4294967040 }
 0x821   :  { %683 = vsyncpa [#allocation3], 1 }

</bundles_post_ra>
